<compile_context>
chip_gen: v5e
topology: v5e:2x2
jax: 0.10.0
libtpu: 0.0.40
codegen_flags: <defaults>
</compile_context>

<pallas_src>
import jax
import jax.numpy as jnp
from jax.experimental import pallas as pl
from jax.experimental.pallas import tpu as pltpu

SQRT_HALF = 0.7071067811865476
BN_EPS = 1e-5
LANE = 128
SUBLANE = 8


def _round_up(n, m):
    return ((n + m - 1) // m) * m


def _gelu_exact(v):
    # Exact (erf-based) GELU, matching torch.nn.GELU() default.
    # TODO(synk): tanh-approx GELU would move the transcendental to the EUP
    # slot (nearly free), but changes numerics vs. PyTorch; kept erf-exact.
    return 0.5 * v * (1.0 + jax.lax.erf(v * SQRT_HALF))


def hash_head_kernel(x_ref, w1_ref, b1_ref, w2_ref, b2_ref, w3_ref, b3_ref,
                     wh_ref, out_ref):
    cdt = w1_ref.dtype  # matmul operand dtype (bf16 on the fast path)

    x = x_ref[...]

    # Linear1 + GELU    (accumulate in f32, biases kept f32)
    h1 = jnp.dot(x, w1_ref[...], preferred_element_type=jnp.float32)
    h1 = _gelu_exact(h1 + b1_ref[...]).astype(cdt)

    # Linear2 + GELU
    h2 = jnp.dot(h1, w2_ref[...], preferred_element_type=jnp.float32)
    h2 = _gelu_exact(h2 + b2_ref[...]).astype(cdt)

    # Linear3 (eval-mode BatchNorm folded into w3/b3 by the wrapper) + GELU
    z = jnp.dot(h2, w3_ref[...], preferred_element_type=jnp.float32)
    z = _gelu_exact(z + b3_ref[...]).astype(cdt)

    # hash: Linear(bottleneck, code_dim, bias=False)
    out_ref[...] = jnp.dot(
        z, wh_ref[...], preferred_element_type=jnp.float32
    ).astype(out_ref.dtype)


def hash_head_forward(x, params, *, tile_b=None, compute_dtype=jnp.bfloat16):
    """x: [B, in_dim] float32. params: dict of weights (see init_params)."""
    B, in_dim = x.shape
    hidden = params["w1"].shape[1]
    bottleneck = params["w3"].shape[1]
    code_dim = params["wh"].shape[1]

    # ---- Fold eval-mode BatchNorm1d into the third Linear (exact) ---------
    scale = params["bn_gamma"] * jax.lax.rsqrt(params["bn_var"] + BN_EPS)
    w3f = params["w3"] * scale                                   # [hid, bot]
    b3f = (params["b3"] - params["bn_mean"]) * scale + params["bn_beta"]

    # ---- Pad every feature dim to a lane multiple (zero pad => exact) -----
    in_p = _round_up(in_dim, LANE)
    hid_p = _round_up(hidden, LANE)
    bot_p = _round_up(bottleneck, LANE)
    code_p = _round_up(code_dim, LANE)

    def pad2(a, r, c):
        return jnp.pad(a, ((0, r - a.shape[0]), (0, c - a.shape[1])))

    w1 = pad2(params["w1"], in_p, hid_p).astype(compute_dtype)
    b1 = pad2(params["b1"], 1, hid_p)                # biases stay f32
    w2 = pad2(params["w2"], hid_p, hid_p).astype(compute_dtype)
    b2 = pad2(params["b2"], 1, hid_p)
    w3 = pad2(w3f, hid_p, bot_p).astype(compute_dtype)
    b3 = pad2(b3f, 1, bot_p)
    wh = pad2(params["wh"], bot_p, code_p).astype(compute_dtype)

    # ---- Batch tiling: fill MXU rows, give the grid multiple steps --------
    if tile_b is None:
        tile_b = 256 if B >= 256 else _round_up(B, SUBLANE)
    B_p = _round_up(max(B, 1), tile_b)
    xp = pad2(x, B_p, in_p).astype(compute_dtype)
    grid = (B_p // tile_b,)

    # ---- VMEM budget (resident weights + double-buffered I/O tiles) -------
    csize = jnp.dtype(compute_dtype).itemsize
    weight_bytes = ((w1.size + w2.size + w3.size + wh.size) * csize
                    + (b1.size + b2.size + b3.size) * 4)
    io_bytes = 2 * (tile_b * in_p * csize + tile_b * code_p * 4)
    interm_bytes = 4 * tile_b * max(hid_p, bot_p) * 4
    vmem_bytes = int(min(max(2 * weight_bytes + io_bytes + interm_bytes
                             + (4 << 20), 32 << 20), 64 << 20))

    flops = 2 * B_p * (in_p * hid_p + hid_p * hid_p
                       + hid_p * bot_p + bot_p * code_p)
    transcendentals = B_p * (2 * hid_p + bot_p)          # one erf per element
    bytes_accessed = int(xp.size * csize + B_p * code_p * 4 + weight_bytes)
    cost = pl.CostEstimate(flops=int(flops),
                           transcendentals=int(transcendentals),
                           bytes_accessed=bytes_accessed)

    def wspec(shape):
        # whole-array block, constant index_map -> fetched once, stays resident
        return pl.BlockSpec(shape, lambda i: (0, 0))

    out_p = pl.pallas_call(
        hash_head_kernel,
        out_shape=jax.ShapeDtypeStruct((B_p, code_p), jnp.float32),
        grid_spec=pltpu.PrefetchScalarGridSpec(
            num_scalar_prefetch=0,
            grid=grid,
            in_specs=[
                pl.BlockSpec((tile_b, in_p), lambda i: (i, 0)),   # x tile
                wspec((in_p, hid_p)),    # w1
                wspec((1, hid_p)),       # b1
                wspec((hid_p, hid_p)),   # w2
                wspec((1, hid_p)),       # b2
                wspec((hid_p, bot_p)),   # w3 (BN folded)
                wspec((1, bot_p)),       # b3 (BN folded)
                wspec((bot_p, code_p)),  # w_hash
            ],
            out_specs=pl.BlockSpec((tile_b, code_p), lambda i: (i, 0)),
        ),
        compiler_params=pltpu.CompilerParams(
            dimension_semantics=("parallel",),
            vmem_limit_bytes=vmem_bytes),
        cost_estimate=cost,
    )(xp, w1, b1, w2, b2, w3, b3, wh)

    return out_p[:B, :code_dim]


def init_params(key, in_dim, hidden_dim, bottleneck_dim, code_dim):
    """Synthetic init mirroring HASHHead._init_weights:
    trunc_normal_(std=0.02) for Linear weights, zero biases, default BN."""
    ks = jax.random.split(key, 4)

    def tn(k, shape):
        return (jax.random.truncated_normal(k, -2.0, 2.0, shape, jnp.float32)
                * 0.02)

    return {
        "w1": tn(ks[0], (in_dim, hidden_dim)),
        "b1": jnp.zeros((1, hidden_dim), jnp.float32),
        "w2": tn(ks[1], (hidden_dim, hidden_dim)),
        "b2": jnp.zeros((1, hidden_dim), jnp.float32),
        "w3": tn(ks[2], (hidden_dim, bottleneck_dim)),
        "b3": jnp.zeros((1, bottleneck_dim), jnp.float32),
        "bn_gamma": jnp.ones((1, bottleneck_dim), jnp.float32),
        "bn_beta": jnp.zeros((1, bottleneck_dim), jnp.float32),
        "bn_mean": jnp.zeros((1, bottleneck_dim), jnp.float32),
        "bn_var": jnp.ones((1, bottleneck_dim), jnp.float32),
        "wh": tn(ks[3], (bottleneck_dim, code_dim)),
    }


def _reference(x, p):
    # Pure-JAX f32 reference matching the PyTorch forward.
    def gelu(v):
        return 0.5 * v * (1.0 + jax.lax.erf(v * SQRT_HALF))
    h1 = gelu(x @ p["w1"] + p["b1"])
    h2 = gelu(h1 @ p["w2"] + p["b2"])
    z = h2 @ p["w3"] + p["b3"]
    z = (z - p["bn_mean"]) * jax.lax.rsqrt(p["bn_var"] + BN_EPS)
    z = gelu(z * p["bn_gamma"] + p["bn_beta"])
    return z @ p["wh"]


if __name__ == "__main__":
    # Small shapes consistent with HASHHead (scaled-down hidden dims):
    # in_dim=32, hidden_dim=64, bottleneck_dim=128, code_dim=12.
    IN_DIM, HIDDEN, BOTTLENECK, CODE = 32, 64, 128, 12

    key = jax.random.PRNGKey(0)
    k_x, k_p = jax.random.split(key)
    params = init_params(k_p, IN_DIM, HIDDEN, BOTTLENECK, CODE)

    # 1) small batch, f32 operands: tight correctness check vs. pure-JAX ref.
    B_small = 8
    x_small = jax.random.normal(k_x, (B_small, IN_DIM), jnp.float32)
    out32 = jax.block_until_ready(
        hash_head_forward(x_small, params, compute_dtype=jnp.float32))
    ref32 = _reference(x_small, params)
    assert out32.shape == (B_small, CODE)
    assert jnp.allclose(out32, ref32, atol=2e-5, rtol=2e-3), "f32 mismatch"

    # 2) larger batch, bf16 operands / f32 accumulation: the performance path
    #    (multi-step parallel grid, 256-row MXU tiles, lane-dense output).
    B_big = 512
    x_big = jax.random.normal(k_x, (B_big, IN_DIM), jnp.float32)
    out16 = jax.block_until_ready(
        hash_head_forward(x_big, params, compute_dtype=jnp.bfloat16))
    ref_big = _reference(x_big, params)
    assert out16.shape == (B_big, CODE)
    assert jnp.allclose(out16, ref_big, atol=2e-3, rtol=5e-2), "bf16 mismatch"

    print("KERNEL_OK")
</pallas_src>

<mosaic_0001>
module attributes {stable_mosaic.version = 11 : i64} {
  func.func @hash_head_kernel(%arg0: i32, %arg1: memref<8x128xf32, #tpu.memory_space<vmem>>, %arg2: memref<128x128xf32, #tpu.memory_space<vmem>>, %arg3: memref<1x128xf32, #tpu.memory_space<vmem>>, %arg4: memref<128x128xf32, #tpu.memory_space<vmem>>, %arg5: memref<1x128xf32, #tpu.memory_space<vmem>>, %arg6: memref<128x128xf32, #tpu.memory_space<vmem>>, %arg7: memref<1x128xf32, #tpu.memory_space<vmem>>, %arg8: memref<128x128xf32, #tpu.memory_space<vmem>>, %arg9: memref<8x128xf32, #tpu.memory_space<vmem>>) attributes {dimension_semantics = [#tpu.dimension_semantics<parallel>], iteration_bounds = array<i64: 1>, scalar_prefetch = 0 : i64, scratch_operands = 0 : i64, tpu.core_type = #tpu.core_type<tc>, window_params = [{transform_indices = @transform_0, window_bounds = array<i64: 8, 128>}, {pipeline_mode = #tpu.pipeline_mode<synchronous>, transform_indices = @transform_1, window_bounds = array<i64: 128, 128>}, {pipeline_mode = #tpu.pipeline_mode<synchronous>, transform_indices = @transform_2, window_bounds = array<i64: 1, 128>}, {pipeline_mode = #tpu.pipeline_mode<synchronous>, transform_indices = @transform_3, window_bounds = array<i64: 128, 128>}, {pipeline_mode = #tpu.pipeline_mode<synchronous>, transform_indices = @transform_4, window_bounds = array<i64: 1, 128>}, {pipeline_mode = #tpu.pipeline_mode<synchronous>, transform_indices = @transform_5, window_bounds = array<i64: 128, 128>}, {pipeline_mode = #tpu.pipeline_mode<synchronous>, transform_indices = @transform_6, window_bounds = array<i64: 1, 128>}, {pipeline_mode = #tpu.pipeline_mode<synchronous>, transform_indices = @transform_7, window_bounds = array<i64: 128, 128>}, {transform_indices = @transform_8, window_bounds = array<i64: 8, 128>}]} {
    %c0 = arith.constant 0 : index
    %c0_0 = arith.constant 0 : index
    %0 = vector.load %arg1[%c0, %c0_0] : memref<8x128xf32, #tpu.memory_space<vmem>>, vector<8x128xf32>
    %c0_1 = arith.constant 0 : index
    %c0_2 = arith.constant 0 : index
    %1 = vector.load %arg2[%c0_1, %c0_2] : memref<128x128xf32, #tpu.memory_space<vmem>>, vector<128x128xf32>
    %cst = arith.constant dense<0.000000e+00> : vector<8x128xf32>
    %2 = tpu.matmul %0, %1, %cst {dimension_numbers = #tpu.dot_dimension_numbers<[1], [0], [0], [1], [0, 0, 1, 1], [], []>} : vector<8x128xf32>, vector<128x128xf32>, vector<8x128xf32> -> vector<8x128xf32>
    %c0_3 = arith.constant 0 : index
    %c0_4 = arith.constant 0 : index
    %3 = vector.load %arg3[%c0_3, %c0_4] : memref<1x128xf32, #tpu.memory_space<vmem>>, vector<1x128xf32>
    %4 = vector.broadcast %3 : vector<1x128xf32> to vector<8x128xf32>
    %5 = arith.addf %2, %4 : vector<8x128xf32>
    %cst_5 = arith.constant 5.000000e-01 : f32
    %6 = vector.broadcast %cst_5 : f32 to vector<8x128xf32>
    %7 = arith.mulf %6, %5 : vector<8x128xf32>
    %cst_6 = arith.constant 0.707106769 : f32
    %8 = vector.broadcast %cst_6 : f32 to vector<8x128xf32>
    %9 = arith.mulf %5, %8 : vector<8x128xf32>
    %10 = math.erf %9 : vector<8x128xf32>
    %cst_7 = arith.constant 1.000000e+00 : f32
    %11 = vector.broadcast %cst_7 : f32 to vector<8x128xf32>
    %12 = arith.addf %11, %10 : vector<8x128xf32>
    %13 = arith.mulf %7, %12 : vector<8x128xf32>
    %c0_8 = arith.constant 0 : index
    %c0_9 = arith.constant 0 : index
    %14 = vector.load %arg4[%c0_8, %c0_9] : memref<128x128xf32, #tpu.memory_space<vmem>>, vector<128x128xf32>
    %cst_10 = arith.constant dense<0.000000e+00> : vector<8x128xf32>
    %15 = tpu.matmul %13, %14, %cst_10 {dimension_numbers = #tpu.dot_dimension_numbers<[1], [0], [0], [1], [0, 0, 1, 1], [], []>} : vector<8x128xf32>, vector<128x128xf32>, vector<8x128xf32> -> vector<8x128xf32>
    %c0_11 = arith.constant 0 : index
    %c0_12 = arith.constant 0 : index
    %16 = vector.load %arg5[%c0_11, %c0_12] : memref<1x128xf32, #tpu.memory_space<vmem>>, vector<1x128xf32>
    %17 = vector.broadcast %16 : vector<1x128xf32> to vector<8x128xf32>
    %18 = arith.addf %15, %17 : vector<8x128xf32>
    %cst_13 = arith.constant 5.000000e-01 : f32
    %19 = vector.broadcast %cst_13 : f32 to vector<8x128xf32>
    %20 = arith.mulf %19, %18 : vector<8x128xf32>
    %cst_14 = arith.constant 0.707106769 : f32
    %21 = vector.broadcast %cst_14 : f32 to vector<8x128xf32>
    %22 = arith.mulf %18, %21 : vector<8x128xf32>
    %23 = math.erf %22 : vector<8x128xf32>
    %cst_15 = arith.constant 1.000000e+00 : f32
    %24 = vector.broadcast %cst_15 : f32 to vector<8x128xf32>
    %25 = arith.addf %24, %23 : vector<8x128xf32>
    %26 = arith.mulf %20, %25 : vector<8x128xf32>
    %c0_16 = arith.constant 0 : index
    %c0_17 = arith.constant 0 : index
    %27 = vector.load %arg6[%c0_16, %c0_17] : memref<128x128xf32, #tpu.memory_space<vmem>>, vector<128x128xf32>
    %cst_18 = arith.constant dense<0.000000e+00> : vector<8x128xf32>
    %28 = tpu.matmul %26, %27, %cst_18 {dimension_numbers = #tpu.dot_dimension_numbers<[1], [0], [0], [1], [0, 0, 1, 1], [], []>} : vector<8x128xf32>, vector<128x128xf32>, vector<8x128xf32> -> vector<8x128xf32>
    %c0_19 = arith.constant 0 : index
    %c0_20 = arith.constant 0 : index
    %29 = vector.load %arg7[%c0_19, %c0_20] : memref<1x128xf32, #tpu.memory_space<vmem>>, vector<1x128xf32>
    %30 = vector.broadcast %29 : vector<1x128xf32> to vector<8x128xf32>
    %31 = arith.addf %28, %30 : vector<8x128xf32>
    %cst_21 = arith.constant 5.000000e-01 : f32
    %32 = vector.broadcast %cst_21 : f32 to vector<8x128xf32>
    %33 = arith.mulf %32, %31 : vector<8x128xf32>
    %cst_22 = arith.constant 0.707106769 : f32
    %34 = vector.broadcast %cst_22 : f32 to vector<8x128xf32>
    %35 = arith.mulf %31, %34 : vector<8x128xf32>
    %36 = math.erf %35 : vector<8x128xf32>
    %cst_23 = arith.constant 1.000000e+00 : f32
    %37 = vector.broadcast %cst_23 : f32 to vector<8x128xf32>
    %38 = arith.addf %37, %36 : vector<8x128xf32>
    %39 = arith.mulf %33, %38 : vector<8x128xf32>
    %c0_24 = arith.constant 0 : index
    %c0_25 = arith.constant 0 : index
    %40 = vector.load %arg8[%c0_24, %c0_25] : memref<128x128xf32, #tpu.memory_space<vmem>>, vector<128x128xf32>
    %cst_26 = arith.constant dense<0.000000e+00> : vector<8x128xf32>
    %41 = tpu.matmul %39, %40, %cst_26 {dimension_numbers = #tpu.dot_dimension_numbers<[1], [0], [0], [1], [0, 0, 1, 1], [], []>} : vector<8x128xf32>, vector<128x128xf32>, vector<8x128xf32> -> vector<8x128xf32>
    %c0_27 = arith.constant 0 : index
    %c0_28 = arith.constant 0 : index
    %42 = vector.load %arg9[%c0_27, %c0_28] : memref<8x128xf32, #tpu.memory_space<vmem>>, vector<8x128xf32>
    tpu.vector_store %arg9[%c0_27, %c0_28], %41 {strides = array<i32>} : memref<8x128xf32, #tpu.memory_space<vmem>>, vector<8x128xf32>,
    return
  }
  func.func @transform_0(%arg0: i32) -> (i32, i32) {
    %c0_i32 = arith.constant 0 : i32
    %c0_i32_0 = arith.constant 0 : i32
    return %arg0, %c0_i32 : i32, i32
  }
  func.func @transform_1(%arg0: i32) -> (i32, i32) {
    %c0_i32 = arith.constant 0 : i32
    %c0_i32_0 = arith.constant 0 : i32
    %c0_i32_1 = arith.constant 0 : i32
    return %c0_i32, %c0_i32_0 : i32, i32
  }
  func.func @transform_2(%arg0: i32) -> (i32, i32) {
    %c0_i32 = arith.constant 0 : i32
    %c0_i32_0 = arith.constant 0 : i32
    %c0_i32_1 = arith.constant 0 : i32
    return %c0_i32, %c0_i32_0 : i32, i32
  }
  func.func @transform_3(%arg0: i32) -> (i32, i32) {
    %c0_i32 = arith.constant 0 : i32
    %c0_i32_0 = arith.constant 0 : i32
    %c0_i32_1 = arith.constant 0 : i32
    return %c0_i32, %c0_i32_0 : i32, i32
  }
  func.func @transform_4(%arg0: i32) -> (i32, i32) {
    %c0_i32 = arith.constant 0 : i32
    %c0_i32_0 = arith.constant 0 : i32
    %c0_i32_1 = arith.constant 0 : i32
    return %c0_i32, %c0_i32_0 : i32, i32
  }
  func.func @transform_5(%arg0: i32) -> (i32, i32) {
    %c0_i32 = arith.constant 0 : i32
    %c0_i32_0 = arith.constant 0 : i32
    %c0_i32_1 = arith.constant 0 : i32
    return %c0_i32, %c0_i32_0 : i32, i32
  }
  func.func @transform_6(%arg0: i32) -> (i32, i32) {
    %c0_i32 = arith.constant 0 : i32
    %c0_i32_0 = arith.constant 0 : i32
    %c0_i32_1 = arith.constant 0 : i32
    return %c0_i32, %c0_i32_0 : i32, i32
  }
  func.func @transform_7(%arg0: i32) -> (i32, i32) {
    %c0_i32 = arith.constant 0 : i32
    %c0_i32_0 = arith.constant 0 : i32
    %c0_i32_1 = arith.constant 0 : i32
    return %c0_i32, %c0_i32_0 : i32, i32
  }
  func.func @transform_8(%arg0: i32) -> (i32, i32) {
    %c0_i32 = arith.constant 0 : i32
    %c0_i32_0 = arith.constant 0 : i32
    return %arg0, %c0_i32 : i32, i32
  }
}

</mosaic_0001>

<bundles_post_ra>
// kernel: tpu_custom_call.1
= control target key start
LH: loop header
LB: loop body
LE: loop exit
PB: predicated region body
PF: predicated region fallthrough
CT: control target
= control target key end

     0   :  { %13 = vsyncpa [#allocation3], 0  ;;  %s667_s0 = inlined_call_operand.hbm [shape: f32[8,128], index: 0, kind: input, shape index: {}]   ;;  %s668_s1 = inlined_call_operand.hbm [shape: f32[128,128], index: 1, kind: input, shape index: {}]   ;;  %s669_s2 = inlined_call_operand.vmem [shape: f32[1,128], index: 2, kind: input, shape index: {}]   ;;  %s670_s3 = inlined_call_operand.hbm [shape: f32[128,128], index: 3, kind: input, shape index: {}]   ;;  %s671_s4 = inlined_call_operand.vmem [shape: f32[1,128], index: 4, kind: input, shape index: {}]   ;;  %s672_s5 = inlined_call_operand.hbm [shape: f32[128,128], index: 5, kind: input, shape index: {}]   ;;  %s673_s6 = inlined_call_operand.vmem [shape: f32[1,128], index: 6, kind: input, shape index: {}]   ;;  %s674_s7 = inlined_call_operand.hbm [shape: f32[128,128], index: 7, kind: input, shape index: {}]   ;;  %s675_s8 = inlined_call_operand.hbm [shape: f32[8,128], index: 8, kind: output, shape index: {}]  }
   0x1   :  { %14 = vsyncpa [#allocation6], 0 }
   0x2   :  { %15 = vsyncpa [#allocation9], 0  ;;  %s32_s29 = sshll.u32 %s668_s1, 4  ;;  %s33_s29 = int_to_ptr.hbm [resolvable:$true] %s32_s29 }
   0x3   :  { %16 = vsyncpa [#allocation4], 0  ;;  %s587_s30 = smov [#allocation5]   ;;  %s62_s12 = sshll.u32 %s672_s5, 4  ;;  %s63_s12 = int_to_ptr.hbm [resolvable:$true] %s62_s12 }
   0x4   :  { %s34_s9 = sshll.u32 %s587_s30, 4  ;;  %s588_s13 = smov 128   ;;  %s35_s9 = int_to_ptr.vmem [resolvable:$true] %s34_s9 }
   0x5   :  { %s589_s14 = smov 8   ;;  %s590_s15 = smov [#allocation8]  }
   0x6   :  { %40 = dma.hbm_to_vmem [thread:$0]  %s33_s29, 2048, %s35_s9, [#allocation6], %s588_s13, %s588_s13, %s589_s14  }
   0x7   :  { %s64_s16 = sshll.u32 %s590_s15, 4  ;;  %s22_s19 = sshll.u32 %s667_s0, 4  ;;  %s65_s16 = int_to_ptr.vmem [resolvable:$true] %s64_s16  ;;  %s23_s19 = int_to_ptr.hbm [resolvable:$true] %s22_s19 }
   0x8   :  { %70 = dma.hbm_to_vmem [thread:$0]  %s63_s12, 2048, %s65_s16, [#allocation9], %s588_s13, %s588_s13, %s589_s14  }
   0x9   :  { %s47_s21 = sshll.u32 %s670_s3, 4  ;;  %s591_s22 = smov [#allocation2]   ;;  %s48_s21 = int_to_ptr.hbm [resolvable:$true] %s47_s21 }
   0xa   :  { %s24_s23 = sshll.u32 %s591_s22, 4  ;;  %s592_s5 = smov [#allocation7]   ;;  %s25_s23 = int_to_ptr.vmem [resolvable:$true] %s24_s23 }
   0xb   :  { %27 = dma.hbm_to_vmem [thread:$0]  %s23_s19, 128, %s25_s23, [#allocation3]  }
   0xc   :  { %s49_s24 = sshll.u32 %s592_s5, 4  ;;  %s77_s27 = sshll.u32 %s674_s7, 4  ;;  %s50_s24 = int_to_ptr.vmem [resolvable:$true] %s49_s24  ;;  %s78_s27 = int_to_ptr.hbm [resolvable:$true] %s77_s27 }
   0xd   :  { %55 = dma.hbm_to_vmem [thread:$0]  %s48_s21, 2048, %s50_s24, [#allocation6], %s588_s13, %s588_s13, %s589_s14  }
   0xe   :  { %s593_s0 = smov [#allocation10]  }
   0xf   :  { %s79_s28 = sshll.u32 %s593_s0, 4  ;;  %s80_s28 = int_to_ptr.vmem [resolvable:$true] %s79_s28 }
  0x10   :  { %85 = dma.hbm_to_vmem [thread:$0]  %s78_s27, 2048, %s80_s28, [#allocation9], %s588_s13, %s588_s13, %s589_s14  }
  0x11   :  { %579 = dma.done.wait [#allocation3], 128  }
  0x12   :  { %580 = vsyncadd [#allocation3], 4294967168 }
  0x13   :  { %581 = dma.done.wait [#allocation6], 4096  }
  0x14   :  { %582 = vsyncadd [#allocation6], 4294963200 }
  0x15   :  { %583 = dma.done.wait [#allocation9], 4096  }
  0x16   :  { %584 = vsyncadd [#allocation9], 4294963200  ;;  %v122_v0 = vld [vmem:[#allocation5 + $0x78] sm:$0xff]  ;;  %v121_v1 = vld [vmem:[#allocation5 + $0x70] sm:$0xff]  ;;  %s403_s12 = sshll.u32 %s675_s8, 4  ;;  %s404_s12 = int_to_ptr.hbm [resolvable:$true] %s403_s12 }
  0x17   :  { %127 = vmatpush.msra.mxu0 %v122_v0  ;;  %v120_v2 = vld [vmem:[#allocation5 + $0x68] sm:$0xff]  ;;  %v119_v3 = vld [vmem:[#allocation5 + $0x60] sm:$0xff]  ;;  %v118_v4 = vld [vmem:[#allocation5 + $0x58] sm:$0xff] }
  0x18   :  { %v117_v5 = vld [vmem:[#allocation5 + $0x50] sm:$0xff]  ;;  %v116_v6 = vld [vmem:[#allocation5 + $0x48] sm:$0xff]  ;;  %v115_v7 = vld [vmem:[#allocation5 + $0x40] sm:$0xff] }
  0x19   :  { %128 = vmatpush.msra.mxu0 %v121_v1  ;;  %v114_v8 = vld [vmem:[#allocation5 + $0x38] sm:$0xff]  ;;  %v113_v9 = vld [vmem:[#allocation5 + $0x30] sm:$0xff]  ;;  %v112_v10 = vld [vmem:[#allocation5 + $0x28] sm:$0xff] }
  0x1a   :  { %v111_v11 = vld [vmem:[#allocation5 + $0x20] sm:$0xff]  ;;  %v110_v12 = vld [vmem:[#allocation5 + $0x18] sm:$0xff]  ;;  %v109_v13 = vld [vmem:[#allocation5 + $0x10] sm:$0xff] }
  0x1b   :  { %129 = vmatpush.msra.mxu0 %v120_v2  ;;  %v108_v14 = vld [vmem:[#allocation5 + $0x8] sm:$0xff]  ;;  %v107_v15 = vld [vmem:[#allocation5] sm:$0xff]  ;;  %v106_v16 = vld [vmem:[#allocation2] sm:$0xff] }
  0x1c   :  { %v206_v17 = vld [vmem:[#allocation7 + $0x78] sm:$0xff]  ;;  %v205_v18 = vld [vmem:[#allocation7 + $0x70] sm:$0xff]  ;;  %v204_v19 = vld [vmem:[#allocation7 + $0x68] sm:$0xff] }
  0x1d   :  { %130 = vmatpush.msra.mxu0 %v119_v3  ;;  %211 = vmatpush.msra.mxu1 %v206_v17  ;;  %v203_v20 = vld [vmem:[#allocation7 + $0x60] sm:$0xff]  ;;  %v426_v21 = vld [vmem:[%s669_s2] ss:$0 sm:$0xff]  ;;  %v201_v23 = vld [vmem:[#allocation7 + $0x50] sm:$0xff] }
  0x1e   :  { %v202_v22 = vld [vmem:[#allocation7 + $0x58] sm:$0xff]  ;;  %v200_v25 = vld [vmem:[#allocation7 + $0x48] sm:$0xff]  ;;  %v199_v27 = vld [vmem:[#allocation7 + $0x40] sm:$0xff] }
  0x1f   :  { %131 = vmatpush.msra.mxu0 %v118_v4  ;;  %212 = vmatpush.msra.mxu1 %v205_v18  ;;  %v198_v29 = vld [vmem:[#allocation7 + $0x38] sm:$0xff]  ;;  %v197_v31 = vld [vmem:[#allocation7 + $0x30] sm:$0xff]  ;;  %v196_v33 = vld [vmem:[#allocation7 + $0x28] sm:$0xff] }
  0x20   :  { %v195_v36 = vld [vmem:[#allocation7 + $0x20] sm:$0xff]  ;;  %v194_v39 = vld [vmem:[#allocation7 + $0x18] sm:$0xff]  ;;  %v193_v42 = vld [vmem:[#allocation7 + $0x10] sm:$0xff] }
  0x21   :  { %132 = vmatpush.msra.mxu0 %v117_v5  ;;  %213 = vmatpush.msra.mxu1 %v204_v19  ;;  %v192_v45 = vld [vmem:[#allocation7 + $0x8] sm:$0xff]  ;;  %v191_v47 = vld [vmem:[#allocation7] sm:$0xff]  ;;  %v285_v17 = vld [vmem:[#allocation8 + $0x50] sm:$0xff] }
  0x23   :  { %133 = vmatpush.msra.mxu0 %v116_v6  ;;  %214 = vmatpush.msra.mxu1 %v203_v20  ;;  %v284_v20 = vld [vmem:[#allocation8 + $0x48] sm:$0xff] }
  0x25   :  { %134 = vmatpush.msra.mxu0 %v115_v7  ;;  %215 = vmatpush.msra.mxu1 %v202_v22  ;;  %v283_v22 = vld [vmem:[#allocation8 + $0x40] sm:$0xff] }
  0x27   :  { %135 = vmatpush.msra.mxu0 %v114_v8  ;;  %216 = vmatpush.msra.mxu1 %v201_v23 }
  0x29   :  { %136 = vmatpush.msra.mxu0 %v113_v9  ;;  %217 = vmatpush.msra.mxu1 %v200_v25 }
  0x2b   :  { %137 = vmatpush.msra.mxu0 %v112_v10  ;;  %218 = vmatpush.msra.mxu1 %v199_v27 }
  0x2d   :  { %138 = vmatpush.msra.mxu0 %v111_v11  ;;  %219 = vmatpush.msra.mxu1 %v198_v29  ;;  %v290_v11 = vld [vmem:[#allocation8 + $0x78] sm:$0xff] }
  0x2e   :  { %295 = vmatpush.msra.mxu2 %v290_v11  ;;  %v369_v11 = vld [vmem:[#allocation10 + $0x50] sm:$0xff] }
  0x2f   :  { %139 = vmatpush.msra.mxu0 %v110_v12  ;;  %220 = vmatpush.msra.mxu1 %v197_v31  ;;  %v289_v12 = vld [vmem:[#allocation8 + $0x70] sm:$0xff]  ;;  %v279_v31 = vld [vmem:[#allocation8 + $0x20] sm:$0xff] }
  0x30   :  { %296 = vmatpush.msra.mxu2 %v289_v12 }
  0x31   :  { %140 = vmatpush.msra.mxu0 %v109_v13  ;;  %221 = vmatpush.msra.mxu1 %v196_v33  ;;  %v288_v13 = vld [vmem:[#allocation8 + $0x68] sm:$0xff] }
  0x32   :  { %297 = vmatpush.msra.mxu2 %v288_v13 }
  0x33   :  { %141 = vmatpush.msra.mxu0 %v108_v14  ;;  %222 = vmatpush.msra.mxu1 %v195_v36  ;;  %v427_v14 = vld [vmem:[%s671_s4] ss:$0 sm:$0xff]  ;;  %v277_v36 = vld [vmem:[#allocation8 + $0x10] sm:$0xff] }
  0x35   :  { %142 = vmatpush.msra.mxu0 %v107_v15  ;;  %223 = vmatpush.msra.mxu1 %v194_v39  ;;  %v287_v15 = vld [vmem:[#allocation8 + $0x60] sm:$0xff]  ;;  %v276_v39 = vld [vmem:[#allocation8 + $0x8] sm:$0xff] }
  0x36   :  { %143 = vmatmul.f32.vlgmr.msra.gmra.mxu0 %v106_v16  ;;  %v286_v16 = vld [vmem:[#allocation8 + $0x58] sm:$0xff]  ;;  %298 = vmatpush.msra.mxu2 %v287_v15 }
  0x37   :  { %224 = vmatpush.msra.mxu1 %v193_v42 }
  0x38   :  { %299 = vmatpush.msra.mxu2 %v286_v16  ;;  %v367_v16 = vld [vmem:[#allocation10 + $0x40] sm:$0xff] }
  0x39   :  { %225 = vmatpush.msra.mxu1 %v192_v45 }
  0x3a   :  { %300 = vmatpush.msra.mxu2 %v285_v17 }
  0x3b   :  { %226 = vmatpush.msra.mxu1 %v191_v47 }
  0x3c   :  { %301 = vmatpush.msra.mxu2 %v284_v20  ;;  %v365_v20 = vld [vmem:[#allocation10 + $0x30] sm:$0xff] }
  0x3e   :  { %302 = vmatpush.msra.mxu2 %v283_v22  ;;  %v364_v22 = vld [vmem:[#allocation10 + $0x28] sm:$0xff] }
  0xb3   :  { %v144_v24 = vpop.f32.mrf.mxu0 }
  0xb4   :  { %v145_v26 = vadd.f32 %v426_v21, %v144_v24  ;;  %v282_v24 = vld [vmem:[#allocation8 + $0x38] sm:$0xff] }
  0xb5   :  { %303 = vmatpush.msra.mxu2 %v282_v24 }
  0xb6   :  { %v148_v28 = vmul.f32 0.70710677, %v145_v26  ;;  %v147_v8 = vmul.f32 0.5, %v145_v26  ;;  %v281_v26 = vld [vmem:[#allocation8 + $0x30] sm:$0xff] }
  0xb7   :  { %304 = vmatpush.msra.mxu2 %v281_v26 }
  0xb8   :  { %v149_v30 = vmul.f32 %v148_v28, %v148_v28 }
  0xba   :  { %v150_v32 = vmin.f32 %v149_v30, 16.0 }
  0xbc   :  { %v151_v34 = vmul.f32 2.1237322e-06, %v150_v32  ;;  %v162_v35 = vmul.f32 3.8918573e-05, %v150_v32 }
  0xbe   :  { %v152_v37 = vadd.f32 0.00028619796, %v151_v34  ;;  %v163_v38 = vadd.f32 0.001143296, %v162_v35  ;;  %v278_v34 = vld [vmem:[#allocation8 + $0x18] sm:$0xff] }
  0xc0   :  { %v153_v40 = vmul.f32 %v152_v37, %v150_v32  ;;  %v164_v41 = vmul.f32 %v163_v38, %v150_v32 }
  0xc2   :  { %v165_v43 = vadd.f32 0.014752088, %v164_v41  ;;  %v154_v44 = vadd.f32 0.0036580483, %v153_v40  ;;  %v275_v41 = vld [vmem:[#allocation8] sm:$0xff] }
  0xc4   :  { %v166_v46 = vmul.f32 %v165_v43, %v150_v32  ;;  %v155_v49 = vmul.f32 %v154_v44, %v150_v32 }
  0xc6   :  { %v167_v48 = vadd.f32 0.112945676, %v166_v46  ;;  %v156_v52 = vadd.f32 0.05243302, %v155_v49 }
  0xc8   :  { %v168_v50 = vmul.f32 %v167_v48, %v150_v32  ;;  %v157_v55 = vmul.f32 %v156_v52, %v150_v32 }
  0xca   :  { %v169_v51 = vadd.f32 0.4994258, %v168_v50  ;;  %v158_v56 = vadd.f32 0.18741608, %v157_v55 }
  0xcc   :  { %v170_v53 = vmul.f32 %v169_v51, %v150_v32  ;;  %v159_v58 = vmul.f32 %v158_v56, %v150_v32 }
  0xce   :  { %v171_v54 = vadd.f32 1.0, %v170_v53  ;;  %v160_v62 = vadd.f32 1.1283791, %v159_v58 }
  0xd0   :  { %429 = vrcp.f32 %v171_v54  ;;  %v183_v61 = vand.u32 2147483648, %v171_v54  ;;  %v181_v0 = vand.u32 2147483647, %v171_v54  ;;  %vm177_vm1 = vweird.f32 %v171_v54 }
  0xd1   :  { %v161_v3 = vmul.f32 %v160_v62, %v148_v28  ;;  %v280_v28 = vld [vmem:[#allocation8 + $0x28] sm:$0xff] }
  0xd2   :  { %v184_v2 = vor.u32 1.1754944e-38, %v183_v61  ;;  %vm182_vm3 = vcmp.eq.f32.partialorder %v181_v0, 8.507059e+37  ;;  %305 = vmatpush.msra.mxu2 %v280_v28  ;;  %v362_v28 = vld [vmem:[#allocation10 + $0x18] sm:$0xff] }
  0xd4   :  { %306 = vmatpush.msra.mxu2 %v279_v31 }
  0xd6   :  { %v430_v57 = vpop.eup %429  ;;  %307 = vmatpush.msra.mxu2 %v278_v34 }
  0xd7   :  { %v173_v59 = vmul.f32 %v430_v57, %v171_v54  ;;  %vm178_vm0 = vweird.f32 %v430_v57 }
  0xd8   :  { %vm179_vm2 = vmor %vm177_vm1, %vm178_vm0  ;;  %308 = vmatpush.msra.mxu2 %v277_v36 }
  0xd9   :  { %v174_v60 = vsub.f32 1.0, %v173_v59 }
  0xda   :  { %309 = vmatpush.msra.mxu2 %v276_v39 }
  0xdb   :  { %v175_v63 = vmul.f32 %v430_v57, %v174_v60 }
  0xdc   :  { %310 = vmatpush.msra.mxu2 %v275_v41 }
  0xdd   :  { %v176_v1 = vadd.f32 %v430_v57, %v175_v63 }
  0xdf   :  { %v180_v4 = vsel %vm179_vm2, %v430_v57, %v176_v1 }
  0xe0   :  { %v185_v5 = vsel %vm182_vm3, %v184_v2, %v180_v4 }
  0xe1   :  { %v186_v6 = vmul.f32 %v185_v5, %v161_v3  ;;  %v374_v5 = vld [vmem:[#allocation10 + $0x78] sm:$0xff] }
  0xe2   :  { %375 = vmatpush.msra.mxu3 %v374_v5 }
  0xe3   :  { %v415_v7 = vclamps-f32 %v186_v6, 1.0  ;;  %v373_v6 = vld [vmem:[#allocation10 + $0x70] sm:$0xff] }
  0xe4   :  { %376 = vmatpush.msra.mxu3 %v373_v6 }
  0xe5   :  { %v189_v9 = vadd.f32 1.0, %v415_v7  ;;  %v372_v7 = vld [vmem:[#allocation10 + $0x68] sm:$0xff] }
  0xe6   :  { %377 = vmatpush.msra.mxu3 %v372_v7 }
  0xe7   :  { %v190_v10 = vmul.f32 %v189_v9, %v147_v8  ;;  %v428_v8 = vld [vmem:[%s673_s6] ss:$0 sm:$0xff]  ;;  %v371_v9 = vld [vmem:[#allocation10 + $0x60] sm:$0xff]  ;;  %s594_s6 = smov [#allocation11]  }
  0xe8   :  { %378 = vmatpush.msra.mxu3 %v371_v9  ;;  %s401_s9 = sshll.u32 %s594_s6, 4  ;;  %s402_s9 = int_to_ptr.vmem [resolvable:$true] %s401_s9 }
  0xe9   :  { %227 = vmatmul.f32.vlgmr.msra.gmra.mxu1 %v190_v10  ;;  %v370_v10 = vld [vmem:[#allocation10 + $0x58] sm:$0xff] }
  0xea   :  { %379 = vmatpush.msra.mxu3 %v370_v10 }
  0xec   :  { %380 = vmatpush.msra.mxu3 %v369_v11 }
 0x166   :  { %v228_v18 = vpop.f32.mrf.mxu1 }
 0x167   :  { %v229_v19 = vadd.f32 %v427_v14, %v228_v18  ;;  %v368_v14 = vld [vmem:[#allocation10 + $0x48] sm:$0xff]  ;;  %v366_v18 = vld [vmem:[#allocation10 + $0x38] sm:$0xff] }
 0x168   :  { %381 = vmatpush.msra.mxu3 %v368_v14 }
 0x169   :  { %v232_v21 = vmul.f32 0.70710677, %v229_v19  ;;  %v231_v2 = vmul.f32 0.5, %v229_v19 }
 0x16a   :  { %382 = vmatpush.msra.mxu3 %v367_v16 }
 0x16b   :  { %v233_v23 = vmul.f32 %v232_v21, %v232_v21 }
 0x16c   :  { %383 = vmatpush.msra.mxu3 %v366_v18 }
 0x16d   :  { %v234_v25 = vmin.f32 %v233_v23, 16.0 }
 0x16e   :  { %384 = vmatpush.msra.mxu3 %v365_v20 }
 0x16f   :  { %v235_v27 = vmul.f32 2.1237322e-06, %v234_v25  ;;  %v246_v29 = vmul.f32 3.8918573e-05, %v234_v25 }
 0x170   :  { %385 = vmatpush.msra.mxu3 %v364_v22 }
 0x171   :  { %v236_v30 = vadd.f32 0.00028619796, %v235_v27  ;;  %v247_v32 = vadd.f32 0.001143296, %v246_v29 }
 0x173   :  { %v237_v33 = vmul.f32 %v236_v30, %v234_v25  ;;  %v248_v35 = vmul.f32 %v247_v32, %v234_v25  ;;  %v361_v30 = vld [vmem:[#allocation10 + $0x10] sm:$0xff] }
 0x175   :  { %v249_v37 = vadd.f32 0.014752088, %v248_v35  ;;  %v238_v38 = vadd.f32 0.0036580483, %v237_v33  ;;  %v360_v33 = vld [vmem:[#allocation10 + $0x8] sm:$0xff]  ;;  %v359_v35 = vld [vmem:[#allocation10] sm:$0xff] }
 0x177   :  { %v250_v40 = vmul.f32 %v249_v37, %v234_v25  ;;  %v239_v43 = vmul.f32 %v238_v38, %v234_v25 }
 0x179   :  { %v251_v42 = vadd.f32 0.112945676, %v250_v40  ;;  %v240_v46 = vadd.f32 0.05243302, %v239_v43 }
 0x17b   :  { %v252_v44 = vmul.f32 %v251_v42, %v234_v25  ;;  %v241_v49 = vmul.f32 %v240_v46, %v234_v25 }
 0x17d   :  { %v253_v45 = vadd.f32 0.4994258, %v252_v44  ;;  %v242_v50 = vadd.f32 0.18741608, %v241_v49 }
 0x17f   :  { %v254_v47 = vmul.f32 %v253_v45, %v234_v25  ;;  %v243_v52 = vmul.f32 %v242_v50, %v234_v25  ;;  %v363_v25 = vld [vmem:[#allocation10 + $0x20] sm:$0xff] }
 0x180   :  { %386 = vmatpush.msra.mxu3 %v363_v25 }
 0x181   :  { %v255_v48 = vadd.f32 1.0, %v254_v47  ;;  %v244_v56 = vadd.f32 1.1283791, %v243_v52 }
 0x182   :  { %387 = vmatpush.msra.mxu3 %v362_v28 }
 0x183   :  { %431 = vrcp.f32 %v255_v48  ;;  %v267_v55 = vand.u32 2147483648, %v255_v48  ;;  %v265_v58 = vand.u32 2147483647, %v255_v48  ;;  %vm261_vm5 = vweird.f32 %v255_v48 }
 0x184   :  { %v245_v61 = vmul.f32 %v244_v56, %v232_v21  ;;  %388 = vmatpush.msra.mxu3 %v361_v30 }
 0x185   :  { %v268_v60 = vor.u32 1.1754944e-38, %v267_v55  ;;  %vm266_vm7 = vcmp.eq.f32.partialorder %v265_v58, 8.507059e+37 }
 0x186   :  { %389 = vmatpush.msra.mxu3 %v360_v33 }
 0x188   :  { %390 = vmatpush.msra.mxu3 %v359_v35 }
 0x189   :  { %v432_v51 = vpop.eup %431 }
 0x18a   :  { %v257_v53 = vmul.f32 %v432_v51, %v255_v48  ;;  %vm262_vm4 = vweird.f32 %v432_v51 }
 0x18b   :  { %vm263_vm6 = vmor %vm261_vm5, %vm262_vm4 }
 0x18c   :  { %v258_v54 = vsub.f32 1.0, %v257_v53 }
 0x18e   :  { %v259_v57 = vmul.f32 %v432_v51, %v258_v54 }
 0x190   :  { %v260_v59 = vadd.f32 %v432_v51, %v259_v57 }
 0x192   :  { %v264_v62 = vsel %vm263_vm6, %v432_v51, %v260_v59 }
 0x193   :  { %v269_v63 = vsel %vm266_vm7, %v268_v60, %v264_v62 }
 0x194   :  { %v270_v0 = vmul.f32 %v269_v63, %v245_v61 }
 0x196   :  { %v416_v1 = vclamps-f32 %v270_v0, 1.0 }
 0x198   :  { %v273_v3 = vadd.f32 1.0, %v416_v1 }
 0x19a   :  { %v274_v4 = vmul.f32 %v273_v3, %v231_v2 }
 0x19c   :  { %311 = vmatmul.f32.vlgmr.msra.gmra.mxu2 %v274_v4 }
 0x21f   :  { %v312_v12 = vpop.f32.mrf.mxu2 }
 0x220   :  { %v313_v13 = vadd.f32 %v428_v8, %v312_v12 }
 0x222   :  { %v316_v15 = vmul.f32 0.70710677, %v313_v13  ;;  %v315_v60 = vmul.f32 0.5, %v313_v13 }
 0x224   :  { %v317_v17 = vmul.f32 %v316_v15, %v316_v15 }
 0x226   :  { %v318_v19 = vmin.f32 %v317_v17, 16.0 }
 0x228   :  { %v319_v21 = vmul.f32 2.1237322e-06, %v318_v19  ;;  %v330_v23 = vmul.f32 3.8918573e-05, %v318_v19 }
 0x22a   :  { %v320_v24 = vadd.f32 0.00028619796, %v319_v21  ;;  %v331_v26 = vadd.f32 0.001143296, %v330_v23 }
 0x22c   :  { %v321_v27 = vmul.f32 %v320_v24, %v318_v19  ;;  %v332_v29 = vmul.f32 %v331_v26, %v318_v19 }
 0x22e   :  { %v333_v31 = vadd.f32 0.014752088, %v332_v29  ;;  %v322_v32 = vadd.f32 0.0036580483, %v321_v27 }
 0x230   :  { %v334_v34 = vmul.f32 %v333_v31, %v318_v19  ;;  %v323_v37 = vmul.f32 %v322_v32, %v318_v19 }
 0x232   :  { %v335_v36 = vadd.f32 0.112945676, %v334_v34  ;;  %v324_v40 = vadd.f32 0.05243302, %v323_v37 }
 0x234   :  { %v336_v38 = vmul.f32 %v335_v36, %v318_v19  ;;  %v325_v43 = vmul.f32 %v324_v40, %v318_v19 }
 0x236   :  { %v337_v39 = vadd.f32 0.4994258, %v336_v38  ;;  %v326_v44 = vadd.f32 0.18741608, %v325_v43 }
 0x238   :  { %v338_v41 = vmul.f32 %v337_v39, %v318_v19  ;;  %v327_v46 = vmul.f32 %v326_v44, %v318_v19 }
 0x23a   :  { %v339_v42 = vadd.f32 1.0, %v338_v41  ;;  %v328_v50 = vadd.f32 1.1283791, %v327_v46 }
 0x23c   :  { %433 = vrcp.f32 %v339_v42  ;;  %v351_v49 = vand.u32 2147483648, %v339_v42  ;;  %v349_v52 = vand.u32 2147483647, %v339_v42  ;;  %vm345_vm9 = vweird.f32 %v339_v42 }
 0x23d   :  { %v329_v55 = vmul.f32 %v328_v50, %v316_v15 }
 0x23e   :  { %v352_v54 = vor.u32 1.1754944e-38, %v351_v49  ;;  %vm350_vm11 = vcmp.eq.f32.partialorder %v349_v52, 8.507059e+37 }
 0x242   :  { %v434_v45 = vpop.eup %433 }
 0x243   :  { %v341_v47 = vmul.f32 %v434_v45, %v339_v42  ;;  %vm346_vm8 = vweird.f32 %v434_v45 }
 0x244   :  { %vm347_vm10 = vmor %vm345_vm9, %vm346_vm8 }
 0x245   :  { %v342_v48 = vsub.f32 1.0, %v341_v47 }
 0x247   :  { %v343_v51 = vmul.f32 %v434_v45, %v342_v48 }
 0x249   :  { %v344_v53 = vadd.f32 %v434_v45, %v343_v51 }
 0x24b   :  { %v348_v56 = vsel %vm347_vm10, %v434_v45, %v344_v53 }
 0x24c   :  { %v353_v57 = vsel %vm350_vm11, %v352_v54, %v348_v56 }
 0x24d   :  { %v354_v58 = vmul.f32 %v353_v57, %v329_v55 }
 0x24f   :  { %v417_v59 = vclamps-f32 %v354_v58, 1.0 }
 0x251   :  { %v357_v61 = vadd.f32 1.0, %v417_v59 }
 0x253   :  { %v358_v62 = vmul.f32 %v357_v61, %v315_v60 }
 0x255   :  { %391 = vmatmul.f32.vlgmr.msra.gmra.mxu3 %v358_v62 }
 0x2d8   :  { %v392_v63 = vpop.f32.mrf.mxu3 }
 0x2d9   :  { %395 = vst [vmem:[#allocation11] sm:$0xff] %v392_v63 }
 0x2da   :  { %406 = dma.vmem_to_hbm [thread:$0]  %s402_s9, 128, %s404_s12, [#allocation4]  }
 0x2db   :  { %585 = dma.done.wait [#allocation4], 128  }
 0x2dc   :  { %586 = vsyncadd [#allocation4], 4294967168 }
 0x2dd   :  { %411 = vsyncpa [#allocation3], 1 }
 0x2de   :  { %412 = vsyncpa [#allocation6], 1 }
 0x2df   :  { %413 = vsyncpa [#allocation9], 1 }
 0x2e0   :  { %414 = vsyncpa [#allocation4], 1 }

</bundles_post_ra>
